<compile_context>
chip_gen: v5e
topology: v5e:2x2
jax: 0.10.0
libtpu: 0.0.40
codegen_flags: <defaults>
</compile_context>

<pallas_src>
import functools

import jax
import jax.numpy as jnp
from jax import lax
from jax.experimental import pallas as pl
from jax.experimental.pallas import tpu as pltpu

EPS = 1e-5
MOMENTUM = 0.9
_MiB = 1024 * 1024


# ----------------------------------------------------------------------------
# Generation detection + per-pass tile budgets
# ----------------------------------------------------------------------------
def _round_down(v, m):
    return (v // m) * m


def _tpu_generation():
    try:
        kind = jax.devices()[0].device_kind.lower()
    except Exception:
        return "unknown"
    if "v5 lite" in kind or "v5e" in kind or "v5litepod" in kind:
        return "v5e"
    if "v6" in kind:
        return "v6e"
    if "v7" in kind:
        return "v7x"
    return "unknown"


def _budgets(gen):
    """(pass1_tile_budget, pass2_tile_budget, vmem_limit_bytes).

    Pass 1 only double-buffers the x tile (2 live tiles); pass 2 double-buffers
    x-in and y-out (4 live tiles), so its per-tile budget is about half.
    """
    if gen == "v5e":      # 16 MiB scoped default, 0.82 TB/s HBM: 2-3 MiB tiles ok
        return 6 * _MiB, 3 * _MiB, 16 * _MiB
    if gen == "v7x":      # 64 MiB physical VMEM, 3.2 TB/s HBM: bigger tiles, set limit
        return 10 * _MiB, 6 * _MiB, 48 * _MiB
    # v6e / unknown       # 128 MiB physical VMEM, ~1.4 TB/s HBM
    return 12 * _MiB, 6 * _MiB, 32 * _MiB


def _pick_lane_tile(hw, c, itemsize, budget):
    """hw_tile for the (N, C, HW) layout: a multiple of 128 (or full extent)."""
    if hw <= 128:
        return hw
    max_tile = max(128, _round_down(budget // max(1, c * itemsize), 128))
    cap = hw if hw % 128 == 0 else _round_down(hw, 128)
    return max(128, min(max_tile, cap))


def _pick_sublane_tile(s, c, itemsize, budget):
    """s_tile for the packed (N, C, S, 128) layout: multiple of 8 (or full S)."""
    max_rows = budget // max(1, c * 128 * itemsize)
    if max_rows >= s or s <= 8:
        return s
    return max(8, _round_down(max_rows, 8))


# ----------------------------------------------------------------------------
# Pass 1: per-N partial per-channel sums (N axis parallel, tile axis arbitrary)
# ----------------------------------------------------------------------------
def _bn_partial_kernel(x_ref, psum_ref, psq_ref, *, tiled_extent, tile,
                       needs_mask, use_mxu):
    t = pl.program_id(1)

    @pl.when(t == 0)
    def _():
        psum_ref[...] = jnp.zeros_like(psum_ref)
        psq_ref[...] = jnp.zeros_like(psq_ref)

    x = x_ref[...].astype(jnp.float32)
    if needs_mask:  # last tile along the spatial axis is partial: zero OOB lanes
        idx = lax.broadcasted_iota(jnp.int32, x.shape, 1)
        x = jnp.where(t * tile + idx < tiled_extent, x, 0.0)

    if use_mxu:
        # (C, hw_tile) layout: lane reductions on the otherwise-idle MXU.
        ones = jnp.ones((x.shape[-1], 1), jnp.float32)
        psum_ref[...] += jnp.dot(x, ones, preferred_element_type=jnp.float32)
        psq_ref[...] += jnp.dot(x * x, ones, preferred_element_type=jnp.float32)
    else:
        # packed (C, s_tile, 128) layout: lane reduce then sublane reduce.
        psum_ref[...] += jnp.sum(jnp.sum(x, axis=-1), axis=-1, keepdims=True)
        psq_ref[...] += jnp.sum(jnp.sum(x * x, axis=-1), axis=-1, keepdims=True)


# ----------------------------------------------------------------------------
# Pass 2: streaming normalize  y = x * scale + shift
# ----------------------------------------------------------------------------
def _bn_apply_kernel(x_ref, scale_ref, shift_ref, y_ref):
    y = x_ref[...].astype(jnp.float32) * scale_ref[...] + shift_ref[...]
    y_ref[...] = y.astype(y_ref.dtype)


# ----------------------------------------------------------------------------
# Wrapper
# ----------------------------------------------------------------------------
def batch_norm_pallas(x_nchw, gamma, beta, moving_mean, moving_var,
                      eps=EPS, momentum=MOMENTUM):
    """Training-mode BatchNorm over an NCHW input.

    Returns (Y (N,C,H,W), new_moving_mean (1,C,1,1), new_moving_var (1,C,1,1)).
    """
    N, C, H, W = x_nchw.shape
    HW = H * W
    M = N * HW
    itemsize = jnp.dtype(x_nchw.dtype).itemsize

    gen = _tpu_generation()
    p1_budget, p2_budget, vmem_limit = _budgets(gen)

    # Small-C packing: fold spatial into sublanes when channels underfill a vreg.
    small_c = 8 * max(1, 4 // itemsize)          # 8 for f32, 16 for bf16
    packed = (HW % 128 == 0) and (C < small_c)

    if packed:
        S = HW // 128
        x_view = x_nchw.reshape(N, C, S, 128)
        t1 = _pick_sublane_tile(S, C, itemsize, p1_budget)
        t2 = _pick_sublane_tile(S, C, itemsize, p2_budget)
        extent = S

        def x_spec(tile):
            return pl.BlockSpec((None, C, tile, 128), lambda n, t: (n, 0, t, 0))

        col_shape = (C, 1, 1)
        col_spec = pl.BlockSpec((C, 1, 1), lambda n, t: (0, 0, 0))
        y_shape = (N, C, S, 128)
    else:
        x_view = x_nchw.reshape(N, C, HW)
        t1 = _pick_lane_tile(HW, C, itemsize, p1_budget)
        t2 = _pick_lane_tile(HW, C, itemsize, p2_budget)
        extent = HW

        def x_spec(tile):
            return pl.BlockSpec((None, C, tile), lambda n, t: (n, 0, t))

        col_shape = (C, 1)
        col_spec = pl.BlockSpec((C, 1), lambda n, t: (0, 0))
        y_shape = (N, C, HW)

    part_spec = pl.BlockSpec((None, C, 1), lambda n, t: (n, 0, 0))
    part_shape = jax.ShapeDtypeStruct((N, C, 1), jnp.float32)

    # ---- pass 1: per-N partial sums ----
    grid1 = (N, pl.cdiv(extent, t1))
    psum, psq = pl.pallas_call(
        functools.partial(_bn_partial_kernel,
                          tiled_extent=extent, tile=t1,
                          needs_mask=(extent % t1) != 0,
                          use_mxu=not packed),
        grid=grid1,
        in_specs=[x_spec(t1)],
        out_specs=(part_spec, part_spec),
        out_shape=(part_shape, part_shape),
        compiler_params=pltpu.CompilerParams(
            dimension_semantics=("parallel", "arbitrary"),
            vmem_limit_bytes=vmem_limit),
        cost_estimate=pl.CostEstimate(
            flops=3 * N * C * HW, transcendentals=0,
            bytes_accessed=N * C * HW * itemsize + 2 * N * C * 4),
    )(x_view)

    # ---- tiny JAX epilogue on (C,1) tensors ----
    total = jnp.sum(psum, axis=0)                       # (C, 1)
    totsq = jnp.sum(psq, axis=0)                        # (C, 1)
    mean = total / M
    var = jnp.maximum(totsq / M - mean * mean, 0.0)     # biased var (matches spec)
    g = gamma.reshape(C, 1).astype(jnp.float32)
    b = beta.reshape(C, 1).astype(jnp.float32)
    scale = g * lax.rsqrt(var + eps)
    shift = b - mean * scale
    new_mm = momentum * moving_mean.reshape(C, 1).astype(jnp.float32) \
        + (1.0 - momentum) * mean
    new_mv = momentum * moving_var.reshape(C, 1).astype(jnp.float32) \
        + (1.0 - momentum) * var

    # ---- pass 2: streaming normalize (fully parallel / megacore-shardable) ----
    grid2 = (N, pl.cdiv(extent, t2))
    y_view = pl.pallas_call(
        _bn_apply_kernel,
        grid=grid2,
        in_specs=[x_spec(t2), col_spec, col_spec],
        out_specs=x_spec(t2),
        out_shape=jax.ShapeDtypeStruct(y_shape, x_nchw.dtype),
        compiler_params=pltpu.CompilerParams(
            dimension_semantics=("parallel", "parallel"),
            vmem_limit_bytes=vmem_limit),
        cost_estimate=pl.CostEstimate(
            flops=2 * N * C * HW, transcendentals=0,
            bytes_accessed=2 * N * C * HW * itemsize + 2 * C * 4),
    )(x_view, scale.reshape(col_shape), shift.reshape(col_shape))

    y = y_view.reshape(N, C, H, W)
    return y, new_mm.reshape(1, C, 1, 1), new_mv.reshape(1, C, 1, 1)


def batch_norm_ref(x, gamma, beta, moving_mean, moving_var):
    """Pure-JAX reference mirroring the PyTorch batch_norm (training branch)."""
    mean = x.mean(axis=(0, 2, 3), keepdims=True)
    var = ((x - mean) ** 2).mean(axis=(0, 2, 3), keepdims=True)
    x_hat = (x - mean) / jnp.sqrt(var + EPS)
    y = gamma * x_hat + beta
    new_mm = MOMENTUM * moving_mean + (1.0 - MOMENTUM) * mean
    new_mv = MOMENTUM * moving_var + (1.0 - MOMENTUM) * var
    return y, new_mm, new_mv


def _run_case(key, N, C, H, W):
    x = jax.random.normal(key, (N, C, H, W), dtype=jnp.float32)
    gamma = jnp.ones((1, C, 1, 1), jnp.float32)
    beta = jnp.zeros((1, C, 1, 1), jnp.float32)
    moving_mean = jnp.zeros((1, C, 1, 1), jnp.float32)
    moving_var = jnp.zeros((1, C, 1, 1), jnp.float32)

    y, new_mm, new_mv = batch_norm_pallas(x, gamma, beta, moving_mean, moving_var)
    jax.block_until_ready((y, new_mm, new_mv))

    y_r, mm_r, mv_r = batch_norm_ref(x, gamma, beta, moving_mean, moving_var)
    assert jnp.allclose(y, y_r, atol=1e-5, rtol=1e-5)
    assert jnp.allclose(new_mm, mm_r, atol=1e-6, rtol=1e-6)
    assert jnp.allclose(new_mv, mv_r, atol=1e-6, rtol=1e-6)


if __name__ == "__main__":
    key = jax.random.PRNGKey(0)
    k1, k2 = jax.random.split(key)

    # Module's nominal shape: small C -> packed (N, C, HW//128, 128) path.
    _run_case(k1, N=2, C=4, H=16, W=16)
    # Non-128-divisible H*W, larger C -> (N, C, HW) path with MXU reductions
    # and cdiv grid + lane masking.
    _run_case(k2, N=2, C=16, H=20, W=20)

    print("KERNEL_OK")
</pallas_src>

<mosaic_0001>
module attributes {stable_mosaic.version = 11 : i64} {
  func.func @_bn_partial_kernel(%arg0: i32, %arg1: i32, %arg2: memref<1x4x2x128xf32, #tpu.memory_space<vmem>>, %arg3: memref<1x4x1xf32, #tpu.memory_space<vmem>>, %arg4: memref<1x4x1xf32, #tpu.memory_space<vmem>>) attributes {dimension_semantics = [#tpu.dimension_semantics<parallel>, #tpu.dimension_semantics<arbitrary>], iteration_bounds = array<i64: 2, 1>, scalar_prefetch = 0 : i64, scratch_operands = 0 : i64, tpu.core_type = #tpu.core_type<tc>, window_params = [{transform_indices = @transform_0, window_bounds = array<i64: 1, 4, 2, 128>}, {transform_indices = @transform_1, window_bounds = array<i64: 1, 4, 1>}, {transform_indices = @transform_2, window_bounds = array<i64: 1, 4, 1>}]} {
    %c0_i32 = arith.constant 0 : i32
    %0 = arith.cmpi eq, %arg1, %c0_i32 : i32
    %1 = arith.extui %0 : i1 to i32
    %c0_i32_0 = arith.constant 0 : i32
    %2 = arith.cmpi ne, %1, %c0_i32_0 : i32
    scf.if %2 {
      %cst_19 = arith.constant 0.000000e+00 : f32
      %24 = vector.broadcast %cst_19 : f32 to vector<4x1xf32>
      %c0_20 = arith.constant 0 : index
      %c0_21 = arith.constant 0 : index
      %c0_22 = arith.constant 0 : index
      %25 = vector.load %arg3[%c0_20, %c0_21, %c0_22] : memref<1x4x1xf32, #tpu.memory_space<vmem>>, vector<1x4x1xf32>
      %26 = vector.shape_cast %25 : vector<1x4x1xf32> to vector<4x1xf32>
      %27 = vector.shape_cast %24 : vector<4x1xf32> to vector<1x4x1xf32>
      tpu.vector_store %arg3[%c0_20, %c0_21, %c0_22], %27 {strides = array<i32>} : memref<1x4x1xf32, #tpu.memory_space<vmem>>, vector<1x4x1xf32>,
      %cst_23 = arith.constant 0.000000e+00 : f32
      %28 = vector.broadcast %cst_23 : f32 to vector<4x1xf32>
      %c0_24 = arith.constant 0 : index
      %c0_25 = arith.constant 0 : index
      %c0_26 = arith.constant 0 : index
      %29 = vector.load %arg4[%c0_24, %c0_25, %c0_26] : memref<1x4x1xf32, #tpu.memory_space<vmem>>, vector<1x4x1xf32>
      %30 = vector.shape_cast %29 : vector<1x4x1xf32> to vector<4x1xf32>
      %31 = vector.shape_cast %28 : vector<4x1xf32> to vector<1x4x1xf32>
      tpu.vector_store %arg4[%c0_24, %c0_25, %c0_26], %31 {strides = array<i32>} : memref<1x4x1xf32, #tpu.memory_space<vmem>>, vector<1x4x1xf32>,
    } else {
    }
    %c0 = arith.constant 0 : index
    %c0_1 = arith.constant 0 : index
    %c0_2 = arith.constant 0 : index
    %c0_3 = arith.constant 0 : index
    %3 = vector.load %arg2[%c0, %c0_1, %c0_2, %c0_3] : memref<1x4x2x128xf32, #tpu.memory_space<vmem>>, vector<1x4x2x128xf32>
    %4 = vector.shape_cast %3 : vector<1x4x2x128xf32> to vector<4x2x128xf32>
    %c0_4 = arith.constant 0 : index
    %c0_5 = arith.constant 0 : index
    %c0_6 = arith.constant 0 : index
    %5 = vector.load %arg3[%c0_4, %c0_5, %c0_6] : memref<1x4x1xf32, #tpu.memory_space<vmem>>, vector<1x4x1xf32>
    %6 = vector.shape_cast %5 : vector<1x4x1xf32> to vector<4x1xf32>
    %cst = arith.constant dense<0.000000e+00> : vector<4x2xf32>
    %7 = vector.multi_reduction <add>, %4, %cst [2] : vector<4x2x128xf32> to vector<4x2xf32>
    %cst_7 = arith.constant dense<0.000000e+00> : vector<4xf32>
    %8 = vector.multi_reduction <add>, %7, %cst_7 [1] : vector<4x2xf32> to vector<4xf32>
    %9 = vector.shape_cast %8 : vector<4xf32> to vector<4x1xf32>
    %10 = arith.addf %6, %9 : vector<4x1xf32>
    %c0_8 = arith.constant 0 : index
    %c0_9 = arith.constant 0 : index
    %c0_10 = arith.constant 0 : index
    %11 = vector.load %arg3[%c0_8, %c0_9, %c0_10] : memref<1x4x1xf32, #tpu.memory_space<vmem>>, vector<1x4x1xf32>
    %12 = vector.shape_cast %11 : vector<1x4x1xf32> to vector<4x1xf32>
    %13 = vector.shape_cast %10 : vector<4x1xf32> to vector<1x4x1xf32>
    tpu.vector_store %arg3[%c0_8, %c0_9, %c0_10], %13 {strides = array<i32>} : memref<1x4x1xf32, #tpu.memory_space<vmem>>, vector<1x4x1xf32>,
    %c0_11 = arith.constant 0 : index
    %c0_12 = arith.constant 0 : index
    %c0_13 = arith.constant 0 : index
    %14 = vector.load %arg4[%c0_11, %c0_12, %c0_13] : memref<1x4x1xf32, #tpu.memory_space<vmem>>, vector<1x4x1xf32>
    %15 = vector.shape_cast %14 : vector<1x4x1xf32> to vector<4x1xf32>
    %16 = arith.mulf %4, %4 : vector<4x2x128xf32>
    %cst_14 = arith.constant dense<0.000000e+00> : vector<4x2xf32>
    %17 = vector.multi_reduction <add>, %16, %cst_14 [2] : vector<4x2x128xf32> to vector<4x2xf32>
    %cst_15 = arith.constant dense<0.000000e+00> : vector<4xf32>
    %18 = vector.multi_reduction <add>, %17, %cst_15 [1] : vector<4x2xf32> to vector<4xf32>
    %19 = vector.shape_cast %18 : vector<4xf32> to vector<4x1xf32>
    %20 = arith.addf %15, %19 : vector<4x1xf32>
    %c0_16 = arith.constant 0 : index
    %c0_17 = arith.constant 0 : index
    %c0_18 = arith.constant 0 : index
    %21 = vector.load %arg4[%c0_16, %c0_17, %c0_18] : memref<1x4x1xf32, #tpu.memory_space<vmem>>, vector<1x4x1xf32>
    %22 = vector.shape_cast %21 : vector<1x4x1xf32> to vector<4x1xf32>
    %23 = vector.shape_cast %20 : vector<4x1xf32> to vector<1x4x1xf32>
    tpu.vector_store %arg4[%c0_16, %c0_17, %c0_18], %23 {strides = array<i32>} : memref<1x4x1xf32, #tpu.memory_space<vmem>>, vector<1x4x1xf32>,
    return
  }
  func.func @transform_0(%arg0: i32, %arg1: i32) -> (i32, i32, i32, i32) {
    %c0_i32 = arith.constant 0 : i32
    %c0_i32_0 = arith.constant 0 : i32
    %c0_i32_1 = arith.constant 0 : i32
    return %arg0, %c0_i32, %arg1, %c0_i32_0 : i32, i32, i32, i32
  }
  func.func @transform_1(%arg0: i32, %arg1: i32) -> (i32, i32, i32) {
    %c0_i32 = arith.constant 0 : i32
    %c0_i32_0 = arith.constant 0 : i32
    %c0_i32_1 = arith.constant 0 : i32
    return %arg0, %c0_i32, %c0_i32_0 : i32, i32, i32
  }
  func.func @transform_2(%arg0: i32, %arg1: i32) -> (i32, i32, i32) {
    %c0_i32 = arith.constant 0 : i32
    %c0_i32_0 = arith.constant 0 : i32
    %c0_i32_1 = arith.constant 0 : i32
    return %arg0, %c0_i32, %c0_i32_0 : i32, i32, i32
  }
}

</mosaic_0001>

<bundles_post_ra>
// kernel: tpu_custom_call.1
= control target key start
LH: loop header
LB: loop body
LE: loop exit
PB: predicated region body
PF: predicated region fallthrough
CT: control target
= control target key end

     0   :  { %8 = vsyncpa [#allocation3], 0  ;;  %s664_s0 = inlined_call_operand.hbm [shape: f32[2,4,2,128], index: 0, kind: input, shape index: {}]   ;;  %s665_s1 = inlined_call_operand.vmem [shape: f32[2,4,1], index: 1, kind: output, shape index: {0}]   ;;  %s666_s2 = inlined_call_operand.vmem [shape: f32[2,4,1], index: 2, kind: output, shape index: {1}]  }
   0x1   :  { %10 = vsyncpa [#allocation3 + $0x1], 0  ;;  %s551_s9 = smov 0   ;;  %s553_s10 = smov 0  }
   0x2   :  { %s555_s11 = smov 0   ;;  %s557_s12 = smov 0  }
   0x3   :  { %s559_s13 = smov 0   ;;  %s561_s14 = smov 0  }
   0x4 LB: > { %s379_s15 = sadd.s32 4294967295, %s531_s14   ;;  %s28_s16 = sadd.s32 1, %s527_s13  ;;  %s531_s14 = sphi %s561_s14, %s16_s14   ;;  %s527_s13 = sphi %s559_s13, %s673_s13   ;;  %s523_s12 = sphi %s557_s12, %s672_s12   ;;  %s519_s11 = sphi %s555_s11, %s671_s11   ;;  %s515_s10 = sphi %s553_s10, %s670_s10   ;;  %s511_s9 = sphi %s551_s9, %s669_s9  }
   0x5   : > { %p30_p0 = scmp.ge.s32.totalorder %s28_s16, 2  ;;  %s37_s17 = sadd.s32 1, %s519_s11 }
   0x6   : > { %p44_p1 = scmp.ne.s32.totalorder %s519_s11, %s515_s10  ;;  %p45_p2 = scmp.eq.s32.totalorder %s531_s14, 0 }
   0x7   : > { %s675_s16 = smov (%p30_p0, %s28_s16), 0  ;;  %p50_p4 = scmp.ne.s32.totalorder %s515_s10, %s511_s9 }
   0x8   : > { %p587_p3 = por %p45_p2, %p44_p1  ;;  %s32_s19 = ssub.s32 %s527_s13, %s675_s16 }
   0x9   : > { %p51_p5 = scmp.eq.s32.totalorder %s379_s15, 0  ;;  %p35_p6 = scmp.eq.s32.totalorder %s32_s19, 0 }
   0xa   : > { %p399_p8 = scmp.lt.s32.totalorder %s531_s14, 2  ;;  %s126_s22 = sand.u32 1, %s519_s11  }
   0xb   : > { %p594_p7 = por %p51_p5, %p50_p4  ;;  %s392_s23 = sshll.u32 %s527_s13, 3 }
   0xc   : > { %s600_s21 = scalar_select %p35_p6, %s519_s11, %s37_s17  }
   0xd   : > { %s383_s24 = sshll.u32 %s126_s22, 3  ;;  %s136_s27 = scalar_lea.hbm %s664_s0, %s392_s23 }
   0xe   : > { %s137_s28 = sshll.u32 %s136_s27, 4  ;;  %s130_s29 = scalar_lea.vmem [#allocation2], %s383_s24  ;;  %s138_s28 = int_to_ptr.hbm [resolvable:$true] %s137_s28 }
   0xf   : > { %s139_s30 = sshll.u32 %s130_s29, 4  ;;  %p396_p9 = pnand %p399_p8, %p587_p3  ;;  %s140_s30 = int_to_ptr.vmem [resolvable:$true] %s139_s30 }
  0x10   : > { %p386_p10 = scmp.ge.s32.totalorder %s531_s14, 1  ;;  %p147_p11 = scmp.lt.s32.totalorder %s531_s14, 3 }
  0x11   : > { %s127_s3 = scalar_lea.sflag [#allocation3], %s126_s22  ;;  %s533_s4 = smov 32  }
  0x12   : > { %s534_s5 = smov 2   ;;  %p148_p12 = pnand %p386_p10, %p147_p11 }
  0x13   : > { %398 = dma.hbm_to_vmem [thread:$0]  (!%p396_p9), %s138_s28, 128, %s140_s30, %s127_s3, %s533_s4, %s533_s4, %s534_s5  }
  0x14   : > { %151 = sbr.rel (%p148_p12) target bundleno = 285 (0x11d), region = 24  ;;  %s153_s6 = sand.u32 (!%p148_p12), 1, %s515_s10  }
  0x15   : > { %s387_s7 = sshll.u32 (!%p148_p12), %s153_s6, 3  ;;  %s154_s8 = scalar_lea.sflag (!%p148_p12), [#allocation3], %s153_s6 }
  0x16   : > { %s157_s9 = scalar_lea.vmem (!%p148_p12), [#allocation2], %s387_s7 }
  0x19   : > { %506 = dma.done.wait (%p594_p7), %s154_s8, 128  }
  0x1a   : > { %508 = vsyncadd (%p594_p7), %s154_s8, 4294967168  ;;  %vm202_vm0 = vcmask 1041408   ;;  %v197_v0 = vld [vmem:[%s157_s9] sm:$0x3]  ;;  %v199_v1 = vld [vmem:[%s157_s9 + $0x4] sm:$0x3]  ;;  %v219_v20 = vlaneseq }
  0x1b   : > { %v203_v2 = vsel %vm202_vm0, %v197_v0, 0.0  ;;  %v240_v3 = vmul.f32 %v197_v0, %v197_v0  ;;  %v209_v4 = vsel %vm202_vm0, %v199_v1, 0.0  ;;  %v198_v5 = vld [vmem:[%s157_s9 + $0x2] sm:$0x3]  ;;  %v242_v7 = vmul.f32 %v199_v1, %v199_v1  ;;  %v200_v12 = vld [vmem:[%s157_s9 + $0x6] sm:$0x3] }
  0x1c   : > { %204 = vadd.xlane.f32.xlu0 %v203_v2  ;;  %210 = vadd.xlane.f32.xlu2 %v209_v4  ;;  %v241_v8 = vmul.f32 %v198_v5, %v198_v5  ;;  %v206_v9 = vsel %vm202_vm0, %v198_v5, 0.0  ;;  %v243_v13 = vmul.f32 %v200_v12, %v200_v12  ;;  %v212_v14 = vsel %vm202_vm0, %v200_v12, 0.0  ;;  %p182_p13 = scmp.lt.s32.totalorder %s523_s12, 1 }
  0x1d   : > { %v244_v6 = vsel %vm202_vm0, %v240_v3, 0.0  ;;  %v250_v10 = vsel %vm202_vm0, %v242_v7, 0.0  ;;  %vm194_vm1 = vcmask 3072   ;;  %v535_v16 = vmov 0.0  }
  0x1e   : > { %245 = vadd.xlane.f32.xlu1 %v244_v6  ;;  %v247_v11 = vsel %vm202_vm0, %v241_v8, 0.0  ;;  %v253_v15 = vsel %vm202_vm0, %v243_v13, 0.0  ;;  %s677_s12 = smov (!%p182_p13, %s523_s12), 1  ;;  %v220_v22 = vand.u32 127, %v219_v20  ;;  %vm225_vm2 = vcmask 1041409  }
  0x1f   : > { %s388_s15 = sshll.u32 %s677_s12, 2  ;;  %vm227_vm3 = vcmask 1042434   ;;  %vm229_vm4 = vcmask 1043459   ;;  %vm232_vm5 = vcmask 11264  }
  0x20   : > { %s629_s19 = scalar_lea.vmem %s665_s1, %s388_s15  ;;  %s636_s23 = scalar_lea.vmem %s666_s2, %s388_s15 }
  0x21   : > { %195 = vst.msk [vmem:[%s629_s19] sm:$0xf] %vm194_vm1, %v535_v16 }
  0x22   : > { %196 = vst.msk [vmem:[%s636_s23] sm:$0xf] %vm194_vm1, %v535_v16 }
  0x24   : > { %207 = vadd.xlane.f32.xlu0 %v206_v9  ;;  %251 = vadd.xlane.f32.xlu2 %v250_v10 }
  0x26   : > { %248 = vadd.xlane.f32.xlu1 %v247_v11 }
  0x28   : > { %v201_v43 = vld [vmem:[%s629_s19] sm:$0xf] }
  0x29   : > { %v239_v45 = vld [vmem:[%s636_s23] sm:$0xf] }
  0x2c   : > { %213 = vadd.xlane.f32.xlu0 %v212_v14 }
  0x2e   : > { %254 = vadd.xlane.f32.xlu1 %v253_v15 }
  0x8f   : > { %v205_v17 = vpop.xlane.xlu0 %204  ;;  %v211_v19 = vpop.xlane.xlu2 %210 }
  0x90   : > { %v221_v25 = vperm.slane %v205_v17, %v220_v22  ;;  %v223_v28 = vperm.slane %v211_v19, %v220_v22 }
  0x91   : > { %v246_v18 = vpop.xlane.xlu1 %245 }
  0x92   : > { %v260_v29 = vperm.slane %v246_v18, %v220_v22 }
  0x97   : > { %v208_v21 = vpop.xlane.xlu0 %207  ;;  %v252_v27 = vpop.xlane.xlu2 %251 }
  0x98   : > { %v222_v24 = vperm.slane %v208_v21, %v220_v22  ;;  %v262_v31 = vperm.slane %v252_v27, %v220_v22 }
  0x99   : > { %v249_v23 = vpop.xlane.xlu1 %248 }
  0x9a   : > { %v261_v26 = vperm.slane %v249_v23, %v220_v22  ;;  %v226_v30 = vsel %vm225_vm2, %v222_v24, %v221_v25 }
  0x9b   : > { %v228_v36 = vsel %vm227_vm3, %v223_v28, %v226_v30 }
  0x9c   : > { %v264_v33 = vsel %vm225_vm2, %v261_v26, %v260_v29 }
  0x9d   : > { %v265_v40 = vsel %vm227_vm3, %v262_v31, %v264_v33 }
  0x9f   : > { %v214_v32 = vpop.xlane.xlu0 %213 }
  0xa0   : > { %v224_v34 = vperm.slane %v214_v32, %v220_v22 }
  0xa1   : > { %v255_v35 = vpop.xlane.xlu1 %254 }
  0xa2   : > { %v263_v37 = vperm.slane %v255_v35, %v220_v22  ;;  %v230_v38 = vsel %vm229_vm4, %v224_v34, %v228_v36 }
  0xa3   : > { %v233_v39 = vsel %vm232_vm5, %v230_v38, 0.0 }
  0xa4   : > { %234 = vadd.xlane.f32.xlu2 %v233_v39  ;;  %v266_v41 = vsel %vm229_vm4, %v263_v37, %v265_v40 }
  0xa5   : > { %v268_v42 = vsel %vm232_vm5, %v266_v41, 0.0 }
  0xa6   : > { %269 = vadd.xlane.f32.xlu0 %v268_v42 }
 0x117   : > { %v235_v44 = vpop.xlane.xlu2 %234 }
 0x118   : > { %v236_v46 = vadd.f32 %v235_v44, %v201_v43 }
 0x119   : > { %v270_v47 = vpop.xlane.xlu0 %269 }
 0x11a   : > { %238 = vst.msk [vmem:[%s629_s19] sm:$0xf] %vm194_vm1, %v236_v46  ;;  %v271_v48 = vadd.f32 %v270_v47, %v239_v45 }
 0x11c   : > { %272 = vst.msk [vmem:[%s636_s23] sm:$0xf] %vm194_vm1, %v271_v48 }
 0x11d PF: > { %s16_s14 = sadd.s32 1, %s531_s14   ;;  %s669_s9 = smov %s515_s10 }
 0x11e   : > { %p13_p0 = scmp.ge.s32.totalorder %s16_s14, 4   ;;  %s670_s10 = smov %s519_s11 }
 0x11f   : > { %s671_s11 = smov %s600_s21  ;;  %s672_s12 = smov %s527_s13 }
 0x120   : > { %s673_s13 = smov %s675_s16  ;;  %15 = sbr.rel (!%p13_p0) target bundleno = 4 (0x4), region = 80 }
 0x125   :  { %306 = vsyncpa [#allocation3], 1 }
 0x126   :  { %308 = vsyncpa [#allocation3 + $0x1], 1 }

</bundles_post_ra>
